<compile_context>
chip_gen: v7x
topology: tpu7x:2x2x1
jax: 0.10.0
libtpu: 0.0.40
codegen_flags: <defaults>
</compile_context>

<pallas_src>
import jax
import jax.numpy as jnp
from jax.experimental import pallas as pl
from jax.experimental.pallas import tpu as pltpu
from jax.scipy.linalg import block_diag

_FOLD = 8      # batch rows folded into one MXU contraction row
_F_IN = 15     # input features (split [4, 4, 4, 3])


def _bsann_kernel(x_ref, w1_ref, w2_ref, w3_ref, o_ref):
    x = x_ref[...].astype(jnp.float32)                                      # (bm/8, 120)
    h1 = jnp.maximum(
        jnp.dot(x, w1_ref[...], preferred_element_type=jnp.float32), 0.0)  # (bm/8, 96)
    h2 = jnp.maximum(
        jnp.dot(h1, w2_ref[...], preferred_element_type=jnp.float32), 0.0)  # (bm/8, 32)
    logits = jnp.dot(h2, w3_ref[...], preferred_element_type=jnp.float32)  # (bm/8, 8)
    o_ref[...] = jax.nn.sigmoid(logits)


def _round_up(v, m):
    return ((v + m - 1) // m) * m


def bsann_hip_forward(x, params, *, block_m=32768, use_bf16=False):
    """x: (N, 15) float32, params: dict of BSANN_Hip weights.  Returns (N, 1)."""
    x = jnp.asarray(x, jnp.float32)
    N, F = x.shape
    assert F == _F_IN, "BSANN_Hip expects 15 input features (split [4,4,4,3])"

    # Pack the 9 tiny weights into 3 block-diagonal matrices, then replicate
    # each 8x block-diagonally so 8 batch rows fold into one contraction row.
    w1 = block_diag(params["w11"], params["w21"],
                    params["w31"], params["w41"]).astype(jnp.float32)   # (15, 12)
    w2 = block_diag(params["w12"], params["w22"],
                    params["w32"], params["w42"]).astype(jnp.float32)   # (12, 4)
    w3 = jnp.asarray(params["w13"], jnp.float32)                        # (4, 1)
    eye = jnp.eye(_FOLD, dtype=jnp.float32)
    w1r = jnp.kron(eye, w1)   # (120, 96)
    w2r = jnp.kron(eye, w2)   # ( 96, 32)
    w3r = jnp.kron(eye, w3)   # ( 32,  8)

    # Batch tile: multiple of 512 rows (so the folded sublane dim bm/8 is a
    # multiple of 64, which also satisfies bf16 sublane packing), no larger
    # than needed for small N, default 32768.
    bm = max(512, _round_up(min(block_m, N), 512))
    n_pad = _round_up(N, bm)
    if n_pad != N:
        x = jnp.pad(x, ((0, n_pad - N), (0, 0)))
    if use_bf16:
        x = x.astype(jnp.bfloat16)   # halves the dominant HBM stream
    # Row-major (free) fold: 8 batch rows -> one 120-wide contraction row.
    xf = x.reshape(n_pad // _FOLD, _FOLD * _F_IN)
    bmf = bm // _FOLD
    grid = (n_pad // bm,)

    # Advisory cost estimate: the folded kernel is HBM-bound.
    flops = (n_pad // _FOLD) * 2 * (120 * 96 + 96 * 32 + 32 * 8)
    bytes_accessed = int(xf.size * xf.dtype.itemsize) + n_pad * 4 \
        + int((w1r.size + w2r.size + w3r.size) * 4)
    cost = pl.CostEstimate(flops=flops, transcendentals=n_pad,
                           bytes_accessed=bytes_accessed)

    out = pl.pallas_call(
        _bsann_kernel,
        out_shape=jax.ShapeDtypeStruct((n_pad // _FOLD, _FOLD), jnp.float32),
        grid_spec=pltpu.PrefetchScalarGridSpec(
            num_scalar_prefetch=0,
            grid=grid,
            in_specs=[
                pl.BlockSpec((bmf, _FOLD * _F_IN), lambda i: (i, 0)),  # batch-tiled x
                pl.BlockSpec(w1r.shape, lambda i: (0, 0)),  # constant block index ->
                pl.BlockSpec(w2r.shape, lambda i: (0, 0)),  #   weights DMA'd once,
                pl.BlockSpec(w3r.shape, lambda i: (0, 0)),  #   not re-fetched per step
            ],
            out_specs=pl.BlockSpec((bmf, _FOLD), lambda i: (i, 0)),
        ),
        compiler_params=pltpu.CompilerParams(
            dimension_semantics=("parallel",)),
        cost_estimate=cost,
    )(xf, w1r, w2r, w3r)

    # (n_pad/8, 8) -> (N, 1): free row-major reinterpretation, padded rows dropped.
    return out.reshape(n_pad, 1)[:N]


def _init_params(key):
    """Deterministic stand-in for torch.randn parameter init."""
    shapes = {
        "w11": (4, 3), "w21": (4, 3), "w31": (4, 3), "w41": (3, 3),
        "w12": (3, 1), "w22": (3, 1), "w32": (3, 1), "w42": (3, 1),
        "w13": (4, 1),
    }
    params = {}
    for name, shp in shapes.items():
        key, sub = jax.random.split(key)
        params[name] = jax.random.normal(sub, shp, dtype=jnp.float32)
    return params


def _reference_forward(x, p):
    relu = lambda a: jnp.maximum(a, 0.0)
    x1, x2, x3, x4 = x[:, 0:4], x[:, 4:8], x[:, 8:12], x[:, 12:15]
    x11 = relu(x1 @ p["w11"]); x21 = relu(x2 @ p["w21"])
    x31 = relu(x3 @ p["w31"]); x41 = relu(x4 @ p["w41"])
    x12 = relu(x11 @ p["w12"]); x22 = relu(x21 @ p["w22"])
    x32 = relu(x31 @ p["w32"]); x42 = relu(x41 @ p["w42"])
    xcat = jnp.concatenate([x12, x22, x32, x42], axis=1)
    return jax.nn.sigmoid(xcat @ p["w13"])


if __name__ == "__main__":
    key = jax.random.PRNGKey(0)
    key, xkey = jax.random.split(key)
    params = _init_params(key)

    # Small deterministic tests:
    #  * N=300 exercises batch padding (not a multiple of the tile).
    #  * N=2048 with block_m=512 exercises a 4-step "parallel" grid.
    for n, bm in ((300, 32768), (2048, 512)):
        x = jax.random.normal(jax.random.fold_in(xkey, n), (n, _F_IN),
                              dtype=jnp.float32)
        y = jax.block_until_ready(bsann_hip_forward(x, params, block_m=bm))
        y_ref = _reference_forward(x, params)
        assert y.shape == (n, 1)
        assert jnp.allclose(y, y_ref, atol=1e-5, rtol=1e-5)

    # bf16-input path (dominant HBM stream halved); looser tolerance vs f32 ref.
    x = jax.random.normal(jax.random.fold_in(xkey, 7), (2048, _F_IN),
                          dtype=jnp.float32)
    y = jax.block_until_ready(
        bsann_hip_forward(x, params, block_m=512, use_bf16=True))
    y_ref = _reference_forward(x, params)
    assert y.shape == (2048, 1)
    assert jnp.allclose(y, y_ref, atol=3e-2)

    print("KERNEL_OK")
</pallas_src>

<mosaic_0001>
module attributes {stable_mosaic.version = 11 : i64} {
  func.func @_bsann_kernel(%arg0: i32, %arg1: memref<64x120xf32, #tpu.memory_space<vmem>>, %arg2: memref<120x96xf32, #tpu.memory_space<vmem>>, %arg3: memref<96x32xf32, #tpu.memory_space<vmem>>, %arg4: memref<32x8xf32, #tpu.memory_space<vmem>>, %arg5: memref<64x8xf32, #tpu.memory_space<vmem>>) attributes {dimension_semantics = [#tpu.dimension_semantics<parallel>], iteration_bounds = array<i64: 1>, scalar_prefetch = 0 : i64, scratch_operands = 0 : i64, tpu.core_type = #tpu.core_type<tc>, window_params = [{transform_indices = @transform_0, window_bounds = array<i64: 64, 120>}, {pipeline_mode = #tpu.pipeline_mode<synchronous>, transform_indices = @transform_1, window_bounds = array<i64: 120, 96>}, {pipeline_mode = #tpu.pipeline_mode<synchronous>, transform_indices = @transform_2, window_bounds = array<i64: 96, 32>}, {pipeline_mode = #tpu.pipeline_mode<synchronous>, transform_indices = @transform_3, window_bounds = array<i64: 32, 8>}, {transform_indices = @transform_4, window_bounds = array<i64: 64, 8>}]} {
    %c0 = arith.constant 0 : index
    %c0_0 = arith.constant 0 : index
    %0 = vector.load %arg1[%c0, %c0_0] : memref<64x120xf32, #tpu.memory_space<vmem>>, vector<64x120xf32>
    %c0_1 = arith.constant 0 : index
    %c0_2 = arith.constant 0 : index
    %1 = vector.load %arg2[%c0_1, %c0_2] : memref<120x96xf32, #tpu.memory_space<vmem>>, vector<120x96xf32>
    %cst = arith.constant dense<0.000000e+00> : vector<64x96xf32>
    %2 = tpu.matmul %0, %1, %cst {dimension_numbers = #tpu.dot_dimension_numbers<[1], [0], [0], [1], [0, 0, 1, 1], [], []>} : vector<64x120xf32>, vector<120x96xf32>, vector<64x96xf32> -> vector<64x96xf32>
    %cst_3 = arith.constant 0.000000e+00 : f32
    %3 = vector.broadcast %cst_3 : f32 to vector<64x96xf32>
    %4 = arith.maximumf %2, %3 : vector<64x96xf32>
    %c0_4 = arith.constant 0 : index
    %c0_5 = arith.constant 0 : index
    %5 = vector.load %arg3[%c0_4, %c0_5] : memref<96x32xf32, #tpu.memory_space<vmem>>, vector<96x32xf32>
    %cst_6 = arith.constant dense<0.000000e+00> : vector<64x32xf32>
    %6 = tpu.matmul %4, %5, %cst_6 {dimension_numbers = #tpu.dot_dimension_numbers<[1], [0], [0], [1], [0, 0, 1, 1], [], []>} : vector<64x96xf32>, vector<96x32xf32>, vector<64x32xf32> -> vector<64x32xf32>
    %cst_7 = arith.constant 0.000000e+00 : f32
    %7 = vector.broadcast %cst_7 : f32 to vector<64x32xf32>
    %8 = arith.maximumf %6, %7 : vector<64x32xf32>
    %c0_8 = arith.constant 0 : index
    %c0_9 = arith.constant 0 : index
    %9 = vector.load %arg4[%c0_8, %c0_9] : memref<32x8xf32, #tpu.memory_space<vmem>>, vector<32x8xf32>
    %cst_10 = arith.constant dense<0.000000e+00> : vector<64x8xf32>
    %10 = tpu.matmul %8, %9, %cst_10 {dimension_numbers = #tpu.dot_dimension_numbers<[1], [0], [0], [1], [0, 0, 1, 1], [], []>} : vector<64x32xf32>, vector<32x8xf32>, vector<64x8xf32> -> vector<64x8xf32>
    %11 = arith.negf %10 : vector<64x8xf32>
    %12 = math.exp %11 : vector<64x8xf32>
    %cst_11 = arith.constant 1.000000e+00 : f32
    %13 = vector.broadcast %cst_11 : f32 to vector<64x8xf32>
    %14 = arith.addf %13, %12 : vector<64x8xf32>
    %15 = arith.divf %13, %14 : vector<64x8xf32>
    %c0_12 = arith.constant 0 : index
    %c0_13 = arith.constant 0 : index
    %16 = vector.load %arg5[%c0_12, %c0_13] : memref<64x8xf32, #tpu.memory_space<vmem>>, vector<64x8xf32>
    tpu.vector_store %arg5[%c0_12, %c0_13], %15 {strides = array<i32>} : memref<64x8xf32, #tpu.memory_space<vmem>>, vector<64x8xf32>,
    return
  }
  func.func @transform_0(%arg0: i32) -> (i32, i32) {
    %c0_i32 = arith.constant 0 : i32
    %c0_i32_0 = arith.constant 0 : i32
    return %arg0, %c0_i32 : i32, i32
  }
  func.func @transform_1(%arg0: i32) -> (i32, i32) {
    %c0_i32 = arith.constant 0 : i32
    %c0_i32_0 = arith.constant 0 : i32
    %c0_i32_1 = arith.constant 0 : i32
    return %c0_i32, %c0_i32_0 : i32, i32
  }
  func.func @transform_2(%arg0: i32) -> (i32, i32) {
    %c0_i32 = arith.constant 0 : i32
    %c0_i32_0 = arith.constant 0 : i32
    %c0_i32_1 = arith.constant 0 : i32
    return %c0_i32, %c0_i32_0 : i32, i32
  }
  func.func @transform_3(%arg0: i32) -> (i32, i32) {
    %c0_i32 = arith.constant 0 : i32
    %c0_i32_0 = arith.constant 0 : i32
    %c0_i32_1 = arith.constant 0 : i32
    return %c0_i32, %c0_i32_0 : i32, i32
  }
  func.func @transform_4(%arg0: i32) -> (i32, i32) {
    %c0_i32 = arith.constant 0 : i32
    %c0_i32_0 = arith.constant 0 : i32
    return %arg0, %c0_i32 : i32, i32
  }
}

</mosaic_0001>

<bundles_post_ra>
// kernel: tpu_custom_call.1
= control target key start
LH: loop header
LB: loop body
LE: loop exit
PB: predicated region body
PF: predicated region fallthrough
CT: control target
= control target key end

     0   :  { %vm40_vm0 = vcmask 982016   ;;  %vm190_vm1 = vcmask 785408   ;;  %vm332_vm2 = vcmask 261120   ;;  %vm510_vm3 = vcmask 64512   ;;  %s1002_s1 = inlined_call_operand.vmem [shape: f32[120,96], index: 1, kind: input, shape index: {}]   ;;  %s1003_s0 = inlined_call_operand.vmem [shape: f32[64,120], index: 0, kind: input, shape index: {}]   ;;  %s1004_s2 = inlined_call_operand.vmem [shape: f32[96,32], index: 2, kind: input, shape index: {}]   ;;  %s1005_s3 = inlined_call_operand.vmem [shape: f32[32,8], index: 3, kind: input, shape index: {}]   ;;  %s1006_s4 = inlined_call_operand.vmem [shape: f32[64,8], index: 4, kind: output, shape index: {}]  }
   0x1   :  { %v25_v0 = vld [vmem:[%s1002_s1] sm:$0xff]  ;;  %v26_v1 = vld [vmem:[%s1002_s1 + $0x8] sm:$0xff]  ;;  %v27_v2 = vld [vmem:[%s1002_s1 + $0x10] sm:$0xff] }
   0x2   :  { %v708_v3 = vpack.c.bf16 %v26_v1, %v25_v0  ;;  %v28_v4 = vld [vmem:[%s1002_s1 + $0x18] sm:$0xff]  ;;  %v29_v6 = vld [vmem:[%s1002_s1 + $0x20] sm:$0xff]  ;;  %v30_v7 = vld [vmem:[%s1002_s1 + $0x28] sm:$0xff] }
   0x3   :  { %v712_v5 = vpack.c.bf16 %v28_v4, %v27_v2  ;;  %v716_v8 = vpack.c.bf16 %v30_v7, %v29_v6  ;;  %v17_v9 = vld [vmem:[%s1003_s0] sm:$0xff]  ;;  %v31_v10 = vld [vmem:[%s1002_s1 + $0x30] sm:$0xff]  ;;  %v32_v11 = vld [vmem:[%s1002_s1 + $0x38] sm:$0xff] }
   0x4   :  { %709 = vmatprep.subr.bf16.mxu0 %v708_v3  ;;  %640 = vmatprep.mubr.msk.f32.mxu0 %vm40_vm0, %v17_v9  ;;  %v178_v12 = vld [vmem:[%s1004_s2] sm:$0xff]  ;;  %v179_v13 = vld [vmem:[%s1004_s2 + $0x8] sm:$0xff]  ;;  %v180_v14 = vld [vmem:[%s1004_s2 + $0x10] sm:$0xff]  ;;  %v720_v16 = vpack.c.bf16 %v32_v11, %v31_v10 }
   0x5   :  { %711 = vmatpush3.bf16.msra.mxu0 %v708_v3  ;;  %v181_v15 = vld [vmem:[%s1004_s2 + $0x18] sm:$0xff]  ;;  %v33_v17 = vld [vmem:[%s1002_s1 + $0x40] sm:$0xff]  ;;  %v736_v18 = vpack.c.bf16 %v179_v13, %v178_v12  ;;  %v34_v20 = vld [vmem:[%s1002_s1 + $0x48] sm:$0xff] }
   0x6   :  { %713 = vmatprep.subr.bf16.mxu0 %v712_v5  ;;  %v740_v19 = vpack.c.bf16 %v181_v15, %v180_v14  ;;  %v182_v21 = vld [vmem:[%s1004_s2 + $0x20] sm:$0xff]  ;;  %v183_v22 = vld [vmem:[%s1004_s2 + $0x28] sm:$0xff]  ;;  %v724_v23 = vpack.c.bf16 %v34_v20, %v33_v17  ;;  %v35_v24 = vld [vmem:[%s1002_s1 + $0x50] sm:$0xff] }
   0x7   :  { %737 = vmatprep.subr.bf16.mxu1 %v736_v18  ;;  %v744_v25 = vpack.c.bf16 %v183_v22, %v182_v21  ;;  %v36_v26 = vld [vmem:[%s1002_s1 + $0x58] sm:$0xff]  ;;  %v184_v27 = vld [vmem:[%s1004_s2 + $0x30] sm:$0xff]  ;;  %v37_v30 = vld [vmem:[%s1002_s1 + $0x60] sm:$0xff] }
   0x8   :  { %739 = vmatpush3.bf16.msra.mxu1 %v736_v18  ;;  %v185_v28 = vld [vmem:[%s1004_s2 + $0x38] sm:$0xff]  ;;  %v728_v29 = vpack.c.bf16 %v36_v26, %v35_v24  ;;  %v38_v32 = vld [vmem:[%s1002_s1 + $0x68] sm:$0xff]  ;;  %v186_v33 = vld [vmem:[%s1004_s2 + $0x40] sm:$0xff] }
   0x9   :  { %715 = vmatpush3.bf16.msra.mxu0 %v712_v5  ;;  %741 = vmatprep.subr.bf16.mxu1 %v740_v19  ;;  %v748_v31 = vpack.c.bf16 %v185_v28, %v184_v27  ;;  %v187_v34 = vld [vmem:[%s1004_s2 + $0x48] sm:$0xff]  ;;  %v732_v35 = vpack.c.bf16 %v38_v32, %v37_v30  ;;  %v39_v37 = vld [vmem:[%s1002_s1 + $0x70] sm:$0xff]  ;;  %v20_v40 = vld [vmem:[%s1003_s0 + $0x18] sm:$0xff] }
   0xa   :  { %717 = vmatprep.subr.bf16.mxu0 %v716_v8  ;;  %v752_v36 = vpack.c.bf16 %v187_v34, %v186_v33  ;;  %v18_v38 = vld [vmem:[%s1003_s0 + $0x8] sm:$0xff]  ;;  %v19_v39 = vld [vmem:[%s1003_s0 + $0x10] sm:$0xff]  ;;  %v21_v41 = vld [vmem:[%s1003_s0 + $0x20] sm:$0xff] }
   0xb   :  { %v22_v42 = vld [vmem:[%s1003_s0 + $0x28] sm:$0xff]  ;;  %v23_v43 = vld [vmem:[%s1003_s0 + $0x30] sm:$0xff]  ;;  %v24_v44 = vld [vmem:[%s1003_s0 + $0x38] sm:$0xff] }
   0xc   :  { %743 = vmatpush3.bf16.msra.mxu1 %v740_v19  ;;  %v188_v45 = vld [vmem:[%s1004_s2 + $0x50] sm:$0xff]  ;;  %v189_v46 = vld [vmem:[%s1004_s2 + $0x58] sm:$0xff]  ;;  %v328_v48 = vld [vmem:[%s1005_s3] sm:$0xff] }
   0xd   :  { %719 = vmatpush3.bf16.msra.mxu0 %v716_v8  ;;  %745 = vmatprep.subr.bf16.mxu1 %v744_v25  ;;  %v756_v47 = vpack.c.bf16 %v189_v46, %v188_v45  ;;  %v329_v49 = vld [vmem:[%s1005_s3 + $0x8] sm:$0xff]  ;;  %v330_v3 = vld [vmem:[%s1005_s3 + $0x10] sm:$0xff]  ;;  %v331_v4 = vld [vmem:[%s1005_s3 + $0x18] sm:$0xff] }
   0xe   :  { %721 = vmatprep.subr.bf16.mxu0 %v720_v16  ;;  %v760_v50 = vpack.c.bf16 %v329_v49, %v328_v48  ;;  %v764_v5 = vpack.c.bf16 %v331_v4, %v330_v3 }
  0x10   :  { %747 = vmatpush3.bf16.msra.mxu1 %v744_v25 }
  0x11   :  { %723 = vmatpush3.bf16.msra.mxu0 %v720_v16  ;;  %749 = vmatprep.subr.bf16.mxu1 %v748_v31 }
  0x12   :  { %725 = vmatprep.subr.bf16.mxu0 %v724_v23 }
  0x14   :  { %751 = vmatpush3.bf16.msra.mxu1 %v748_v31 }
  0x15   :  { %727 = vmatpush3.bf16.msra.mxu0 %v724_v23  ;;  %753 = vmatprep.subr.bf16.mxu1 %v752_v36 }
  0x16   :  { %729 = vmatprep.subr.bf16.mxu0 %v728_v29 }
  0x18   :  { %755 = vmatpush3.bf16.msra.mxu1 %v752_v36 }
  0x19   :  { %731 = vmatpush3.bf16.msra.mxu0 %v728_v29  ;;  %757 = vmatprep.subr.bf16.mxu1 %v756_v47 }
  0x1a   :  { %733 = vmatprep.subr.bf16.mxu0 %v732_v35 }
  0x1c   :  { %759 = vmatpush3.bf16.msra.mxu1 %v756_v47 }
  0x1d   :  { %735 = vmatpush3.bf16.msra.mxu0 %v732_v35  ;;  %768 = vmatprep.subr.bf16.mxu1 %v760_v50 }
  0x1e   :  { %638 = vmatprep.subr.mxu0 %v39_v37 }
  0x21   :  { %639 = vmatpush3.msra.mxu0 %v39_v37 }
  0x22   :  { %641 = vmatmul.mubr.msk.f32.vlgmr.msra.gmra.mrb[0].mxu0 %vm40_vm0, %v18_v38  ;;  %761 = vmatprep.subr.bf16.mxu0 %v760_v50 }
  0x23   :  { %643 = vmatprep.mubr.msk.f32.mxu0 %vm40_vm0, %v19_v39  ;;  %763 = vmatpush3.bf16.msra.mxu0 %v760_v50 }
  0x24   :  { %765 = vmatprep.subr.bf16.mxu0 %v764_v5 }
  0x26   :  { %644 = vmatmul.mubr.msk.f32.gmra.mrb[2].mxu0 %vm40_vm0, %v20_v40 }
  0x27   :  { %646 = vmatprep.mubr.msk.f32.mxu0 %vm40_vm0, %v21_v41  ;;  %767 = vmatpush3.bf16.msra.mxu0 %v764_v5 }
  0x2a   :  { %647 = vmatmul.mubr.msk.f32.gmra.mrb[4].mxu0 %vm40_vm0, %v22_v42 }
  0x2b   :  { %649 = vmatprep.mubr.msk.f32.mxu0 %vm40_vm0, %v23_v43 }
  0x2e   :  { %650 = vmatmul.mubr.msk.f32.gmra.mrb[6].mxu0 %vm40_vm0, %v24_v44 }
  0xf5   :  { %v642_v51 = vpop.f32.mrb[0].mxu0 }
  0xf6   :  { %v131_v52 = vpop.f32.mrb[1].mxu0  ;;  %v171_v54 = vmax.f32 %v642_v51, 0.0 }
  0xf7   :  { %v170_v53 = vmax.f32 %v131_v52, 0.0 }
  0xf9   :  { %v645_v55 = vpop.f32.mrb[2].mxu0  ;;  %676 = vmatprep.mubr.msk.f32.mxu1 %vm190_vm1, %v170_v53 }
  0xfa   :  { %v141_v56 = vpop.f32.mrb[3].mxu0  ;;  %677 = vmatmul.mubr.msk.f32.vlgmr.msra.gmra.mrb[0].mxu1 %vm190_vm1, %v171_v54  ;;  %v173_v58 = vmax.f32 %v645_v55, 0.0 }
  0xfb   :  { %v172_v57 = vmax.f32 %v141_v56, 0.0  ;;  %770 = vmatpush3.bf16.msra.mxu1 %v760_v50 }
  0xfc   :  { %769 = vmatprep.subr.bf16.mxu1 %v764_v5 }
  0xfd   :  { %v648_v59 = vpop.f32.mrb[4].mxu0  ;;  %679 = vmatprep.mubr.msk.f32.mxu1 %vm190_vm1, %v172_v57 }
  0xfe   :  { %v151_v60 = vpop.f32.mrb[5].mxu0  ;;  %680 = vmatmul.mubr.msk.f32.gmra.mrb[2].mxu1 %vm190_vm1, %v173_v58  ;;  %v175_v62 = vmax.f32 %v648_v59, 0.0 }
  0xff   :  { %v174_v61 = vmax.f32 %v151_v60, 0.0  ;;  %771 = vmatpush3.bf16.msra.mxu1 %v764_v5 }
 0x101   :  { %v651_v63 = vpop.f32.mrb[6].mxu0  ;;  %682 = vmatprep.mubr.msk.f32.mxu1 %vm190_vm1, %v174_v61 }
 0x102   :  { %v161_v0 = vpop.f32.mrb[7].mxu0  ;;  %683 = vmatmul.mubr.msk.f32.gmra.mrb[4].mxu1 %vm190_vm1, %v175_v62  ;;  %v177_v2 = vmax.f32 %v651_v63, 0.0 }
 0x103   :  { %v176_v1 = vmax.f32 %v161_v0, 0.0 }
 0x105   :  { %685 = vmatprep.mubr.msk.f32.mxu1 %vm190_vm1, %v176_v1 }
 0x106   :  { %686 = vmatmul.mubr.msk.f32.gmra.mrb[6].mxu1 %vm190_vm1, %v177_v2 }
 0x1cd   :  { %v678_v6 = vpop.f32.mrb[0].mxu1 }
 0x1ce   :  { %v281_v7 = vpop.f32.mrb[1].mxu1  ;;  %v321_v9 = vmax.f32 %v678_v6, 0.0 }
 0x1cf   :  { %v320_v8 = vmax.f32 %v281_v7, 0.0 }
 0x1d1   :  { %v681_v10 = vpop.f32.mrb[2].mxu1  ;;  %696 = vmatprep.mubr.msk.f32.mxu0 %vm332_vm2, %v320_v8 }
 0x1d2   :  { %v291_v11 = vpop.f32.mrb[3].mxu1  ;;  %697 = vmatmul.mubr.msk.f32.vlgmr.msra.gmra.mrb[8].mxu0 %vm332_vm2, %v321_v9  ;;  %v323_v13 = vmax.f32 %v681_v10, 0.0 }
 0x1d3   :  { %v322_v12 = vmax.f32 %v291_v11, 0.0 }
 0x1d5   :  { %v684_v14 = vpop.f32.mrb[4].mxu1  ;;  %699 = vmatprep.mubr.msk.f32.mxu1 %vm332_vm2, %v322_v12 }
 0x1d6   :  { %v301_v15 = vpop.f32.mrb[5].mxu1  ;;  %700 = vmatmul.mubr.msk.f32.vlgmr.msra.gmra.mrb[8].mxu1 %vm332_vm2, %v323_v13  ;;  %v325_v17 = vmax.f32 %v684_v14, 0.0 }
 0x1d7   :  { %v324_v16 = vmax.f32 %v301_v15, 0.0 }
 0x1d9   :  { %v687_v18 = vpop.f32.mrb[6].mxu1  ;;  %702 = vmatprep.mubr.msk.f32.mxu1 %vm332_vm2, %v324_v16 }
 0x1da   :  { %v311_v19 = vpop.f32.mrb[7].mxu1  ;;  %703 = vmatmul.mubr.msk.f32.gmra.mrb[10].mxu1 %vm332_vm2, %v325_v17  ;;  %v327_v21 = vmax.f32 %v687_v18, 0.0 }
 0x1db   :  { %v326_v20 = vmax.f32 %v311_v19, 0.0 }
 0x1dd   :  { %705 = vmatprep.mubr.msk.f32.mxu1 %vm332_vm2, %v326_v20 }
 0x1de   :  { %706 = vmatmul.mubr.msk.f32.gmra.mrb[12].mxu1 %vm332_vm2, %v327_v21 }
 0x2a5   :  { %v698_v22 = vpop.f32.mrb[8].mxu0 }
 0x2a6   :  { %v548_v23 = vmul.f32 -1.442695, %v698_v22  ;;  %v423_v24 = vpop.f32.mrb[9].mxu0 }
 0x2a7   :  { %v547_v25 = vmul.f32 -1.442695, %v423_v24 }
 0x2a8   :  { %772 = vpow2.f32 %v548_v23 }
 0x2a9   :  { %774 = vpow2.f32 %v547_v25  ;;  %v701_v26 = vpop.f32.mrb[8].mxu1 }
 0x2aa   :  { %v550_v27 = vmul.f32 -1.442695, %v701_v26  ;;  %v433_v28 = vpop.f32.mrb[9].mxu1 }
 0x2ab   :  { %v549_v29 = vmul.f32 -1.442695, %v433_v28 }
 0x2ac   :  { %776 = vpow2.f32 %v550_v27 }
 0x2ad   :  { %778 = vpow2.f32 %v549_v29  ;;  %v704_v30 = vpop.f32.mrb[10].mxu1 }
 0x2ae   :  { %v552_v31 = vmul.f32 -1.442695, %v704_v30  ;;  %v443_v32 = vpop.f32.mrb[11].mxu1 }
 0x2af   :  { %v551_v33 = vmul.f32 -1.442695, %v443_v32 }
 0x2b0   :  { %780 = vpow2.f32 %v552_v31 }
 0x2b1   :  { %782 = vpow2.f32 %v551_v33  ;;  %v707_v34 = vpop.f32.mrb[12].mxu1 }
 0x2b2   :  { %v773_v35 = vpop.eup %772  ;;  %v554_v36 = vmul.f32 -1.442695, %v707_v34  ;;  %v453_v37 = vpop.f32.mrb[13].mxu1 }
 0x2b3   :  { %v775_v38 = vpop.eup %774  ;;  %v487_v39 = vadd.f32 1.0, %v773_v35  ;;  %v553_v40 = vmul.f32 -1.442695, %v453_v37 }
 0x2b4   :  { %v486_v41 = vadd.f32 1.0, %v775_v38  ;;  %784 = vpow2.f32 %v554_v36 }
 0x2b5   :  { %786 = vrcp.f32 %v487_v39 }
 0x2b6   :  { %v777_v42 = vpop.eup %776  ;;  %788 = vrcp.f32 %v486_v41 }
 0x2b7   :  { %v779_v43 = vpop.eup %778  ;;  %v489_v44 = vadd.f32 1.0, %v777_v42  ;;  %790 = vpow2.f32 %v553_v40 }
 0x2b8   :  { %v488_v45 = vadd.f32 1.0, %v779_v43 }
 0x2b9   :  { %792 = vrcp.f32 %v489_v44 }
 0x2ba   :  { %v781_v46 = vpop.eup %780  ;;  %794 = vrcp.f32 %v488_v45 }
 0x2bb   :  { %v783_v47 = vpop.eup %782  ;;  %v491_v48 = vadd.f32 1.0, %v781_v46 }
 0x2bc   :  { %v490_v49 = vadd.f32 1.0, %v783_v47 }
 0x2bd   :  { %796 = vrcp.f32 %v491_v48 }
 0x2be   :  { %v785_v50 = vpop.eup %784  ;;  %798 = vrcp.f32 %v490_v49 }
 0x2bf   :  { %v787_v51 = vpop.eup %786  ;;  %v493_v52 = vadd.f32 1.0, %v785_v50 }
 0x2c0   :  { %v789_v53 = vpop.eup %788  ;;  %512 = vst.msk [vmem:[%s1006_s4 + $0x8] sm:$0xff] %vm510_vm3, %v787_v51 }
 0x2c1   :  { %v791_v54 = vpop.eup %790  ;;  %511 = vst.msk [vmem:[%s1006_s4] sm:$0xff] %vm510_vm3, %v789_v53  ;;  %800 = vrcp.f32 %v493_v52 }
 0x2c2   :  { %v492_v55 = vadd.f32 1.0, %v791_v54 }
 0x2c3   :  { %v793_v56 = vpop.eup %792 }
 0x2c4   :  { %v795_v57 = vpop.eup %794  ;;  %514 = vst.msk [vmem:[%s1006_s4 + $0x18] sm:$0xff] %vm510_vm3, %v793_v56  ;;  %802 = vrcp.f32 %v492_v55 }
 0x2c5   :  { %513 = vst.msk [vmem:[%s1006_s4 + $0x10] sm:$0xff] %vm510_vm3, %v795_v57 }
 0x2c7   :  { %v797_v58 = vpop.eup %796 }
 0x2c8   :  { %v799_v59 = vpop.eup %798  ;;  %516 = vst.msk [vmem:[%s1006_s4 + $0x28] sm:$0xff] %vm510_vm3, %v797_v58 }
 0x2c9   :  { %515 = vst.msk [vmem:[%s1006_s4 + $0x20] sm:$0xff] %vm510_vm3, %v799_v59 }
 0x2cb   :  { %v801_v60 = vpop.eup %800 }
 0x2cc   :  { %518 = vst.msk [vmem:[%s1006_s4 + $0x38] sm:$0xff] %vm510_vm3, %v801_v60 }
 0x2ce   :  { %v803_v61 = vpop.eup %802 }
 0x2cf   :  { %517 = vst.msk [vmem:[%s1006_s4 + $0x30] sm:$0xff] %vm510_vm3, %v803_v61 }

</bundles_post_ra>
